<compile_context>
chip_gen: v5e
topology: v5e:2x2
jax: 0.10.0
libtpu: 0.0.40
codegen_flags: <defaults>
</compile_context>

<pallas_src>
import math
from functools import partial

import jax
import jax.numpy as jnp
from jax.experimental import pallas as pl
from jax.experimental.pallas import tpu as pltpu

_LANE = 128
# ~2 MiB per block: double-buffered (in + out) = 8 MiB, safely under the
# 16 MiB scoped-VMEM default on v5e (32 MiB on v6e/v7x), while still large
# enough (>= 512 KiB) to sit near the HBM roofline.
_TARGET_BLOCK_BYTES = 2 * 1024 * 1024


def _copy_kernel(x_ref, o_ref):
    # Identity copy of the current (block_rows, width) tile.
    o_ref[...] = x_ref[...]


def _sublane_multiple(dtype) -> int:
    # f32 -> 8, bf16/f16 -> 16, int8/fp8 -> 32 (sub-32-bit packs along sublanes).
    itemsize = jnp.dtype(dtype).itemsize
    return max(8, 32 // itemsize)


@partial(jax.jit, static_argnames=("block_rows",), donate_argnums=(0,))
def _pallas_copy_2d(x2d, *, block_rows):
    """Tiled identity copy of a lane-dense (rows, width) view, in place in HBM."""
    rows, width = x2d.shape
    nbytes = rows * width * jnp.dtype(x2d.dtype).itemsize
    grid = (pl.cdiv(rows, block_rows),)
    return pl.pallas_call(
        _copy_kernel,
        out_shape=jax.ShapeDtypeStruct((rows, width), x2d.dtype),
        grid=grid,
        in_specs=[pl.BlockSpec((block_rows, width), lambda i: (i, 0))],
        out_specs=pl.BlockSpec((block_rows, width), lambda i: (i, 0)),
        input_output_aliases={0: 0},
        compiler_params=pltpu.CompilerParams(
            dimension_semantics=("parallel",),
        ),
        cost_estimate=pl.CostEstimate(
            flops=0, transcendentals=0, bytes_accessed=2 * nbytes),
    )(x2d)


class Reshaper:
    """JAX/Pallas equivalent of the PyTorch Reshaper module."""

    def __init__(self, dim):
        self.dim = tuple(dim)

    def __call__(self, x):
        n = math.prod(x.shape)

        # Resolve a possible -1 in the target dim (torch.reshape semantics).
        dim = list(self.dim)
        if -1 in dim:
            known = math.prod(d for d in dim if d != -1)
            dim[dim.index(-1)] = n // known
        dim = tuple(dim)
        assert math.prod(dim) == n, "reshape size mismatch"

        dtype = x.dtype
        itemsize = jnp.dtype(dtype).itemsize
        sub = _sublane_multiple(dtype)

        # Pick a wide lane width (multiple of 128) that divides n exactly,
        # preferring widths that still leave >= `sub` rows.  No pad, no slice.
        width = None
        for cand in (4096, 2048, 1024, 512, 256, 128):
            if n % cand == 0 and (n // cand) >= sub:
                width = cand
                break
        if width is None:
            for cand in (4096, 2048, 1024, 512, 256, 128):
                if n % cand == 0:
                    width = cand
                    break

        if width is None:
            # Ragged element count (not a multiple of 128): copy the whole
            # array as one full-extent block (legal for any shape).
            # TODO(synk): tile with a masked tail (pltpu.store + lane mask)
            # instead of a single block for very large ragged inputs.
            x2d = jnp.reshape(x, (1, n))
            y2d = _pallas_copy_2d(x2d, block_rows=1)
            return jnp.reshape(y2d, dim)

        rows = n // width

        # Block rows: aim for ~2 MiB blocks; either the full row extent (always
        # legal) or a (sub, 128)-aligned tile whose ragged tail is handled by a
        # Pallas partial block (grid = cdiv) -- never a wrapper pad or slice.
        max_rows = max(sub, _TARGET_BLOCK_BYTES // (width * itemsize))
        if rows <= max_rows:
            block_rows = rows
        else:
            block_rows = (max_rows // sub) * sub

        x2d = jnp.reshape(x, (rows, width))
        y2d = _pallas_copy_2d(x2d, block_rows=block_rows)
        return jnp.reshape(y2d, dim)


if __name__ == "__main__":
    key = jax.random.PRNGKey(0)
    # Small NCHW-like input: batch=2, channels=4, spatial=16x16.
    x = jax.random.normal(key, (2, 4, 16, 16), dtype=jnp.float32)

    # Explicit target shape: 2*4*16*16 = 2048 elements.
    target_dim = (2, 4, 256)
    y = Reshaper(target_dim)(x)
    y = jax.block_until_ready(y)
    ref = jnp.reshape(x, target_dim)
    assert y.shape == target_dim and y.dtype == x.dtype
    assert bool(jnp.all(y == ref))

    # Target shape with -1 (torch.reshape semantics).
    y2 = Reshaper((2, -1, 16))(x)
    y2 = jax.block_until_ready(y2)
    ref2 = jnp.reshape(x, (2, -1, 16))
    assert y2.shape == (2, 64, 16) and y2.dtype == x.dtype
    assert bool(jnp.all(y2 == ref2))

    print("KERNEL_OK")
</pallas_src>

<mosaic_0001>
module attributes {stable_mosaic.version = 11 : i64} {
  func.func @_copy_kernel(%arg0: i32, %arg1: memref<8x256xf32, #tpu.memory_space<vmem>>, %arg2: memref<8x256xf32, #tpu.memory_space<vmem>>) attributes {dimension_semantics = [#tpu.dimension_semantics<parallel>], iteration_bounds = array<i64: 1>, scalar_prefetch = 0 : i64, scratch_operands = 0 : i64, tpu.core_type = #tpu.core_type<tc>, window_params = [{transform_indices = @transform_0, window_bounds = array<i64: 8, 256>}, {transform_indices = @transform_1, window_bounds = array<i64: 8, 256>}]} {
    %c0 = arith.constant 0 : index
    %c0_0 = arith.constant 0 : index
    %0 = vector.load %arg1[%c0, %c0_0] : memref<8x256xf32, #tpu.memory_space<vmem>>, vector<8x256xf32>
    %c0_1 = arith.constant 0 : index
    %c0_2 = arith.constant 0 : index
    %1 = vector.load %arg2[%c0_1, %c0_2] : memref<8x256xf32, #tpu.memory_space<vmem>>, vector<8x256xf32>
    tpu.vector_store %arg2[%c0_1, %c0_2], %0 {strides = array<i32>} : memref<8x256xf32, #tpu.memory_space<vmem>>, vector<8x256xf32>,
    return
  }
  func.func @transform_0(%arg0: i32) -> (i32, i32) {
    %c0_i32 = arith.constant 0 : i32
    %c0_i32_0 = arith.constant 0 : i32
    return %arg0, %c0_i32 : i32, i32
  }
  func.func @transform_1(%arg0: i32) -> (i32, i32) {
    %c0_i32 = arith.constant 0 : i32
    %c0_i32_0 = arith.constant 0 : i32
    return %arg0, %c0_i32 : i32, i32
  }
}

</mosaic_0001>

<bundles_post_ra>
// kernel: _pallas_copy_2d.1
= control target key start
LH: loop header
LB: loop body
LE: loop exit
PB: predicated region body
PF: predicated region fallthrough
CT: control target
= control target key end

     0   :  { %6 = vsyncpa [#allocation3], 0  ;;  %s116_s0 = inlined_call_operand.hbm [shape: f32[8,256], index: 0, kind: input, shape index: {}, may-alias: {0,1}]   ;;  %s117_s1 = inlined_call_operand.hbm [shape: f32[8,256], index: 1, kind: output, shape index: {}, may-alias: {0,1}]  }
   0x1   :  { %7 = vsyncpa [#allocation4], 0  ;;  %s13_s8 = sshll.u32 %s116_s0, 4  ;;  %s98_s9 = smov [#allocation2]   ;;  %s14_s8 = int_to_ptr.hbm [resolvable:$true] %s13_s8 }
   0x2   :  { %s15_s10 = sshll.u32 %s98_s9, 4  ;;  %s16_s10 = int_to_ptr.vmem [resolvable:$true] %s15_s10 }
   0x3   :  { %18 = dma.hbm_to_vmem [thread:$0]  %s14_s8, 256, %s16_s10, [#allocation3]  }
   0x4   :  { %94 = dma.done.wait [#allocation3], 256  }
   0x5   :  { %95 = vsyncadd [#allocation3], 4294967040  ;;  %s99_s11 = smov [#allocation5]   ;;  %s34_s15 = sshll.u32 %s117_s1, 4  ;;  %v23_v0 = vld [vmem:[#allocation2] sm:$0xff]  ;;  %v24_v1 = vld [vmem:[#allocation2 + $0x8] sm:$0xff]  ;;  %s35_s15 = int_to_ptr.hbm [resolvable:$true] %s34_s15 }
   0x6   :  { %s32_s12 = sshll.u32 %s99_s11, 4  ;;  %25 = vst [vmem:[#allocation5] sm:$0xff] %v23_v0  ;;  %s33_s12 = int_to_ptr.vmem [resolvable:$true] %s32_s12 }
   0x7   :  { %26 = vst [vmem:[#allocation5 + $0x8] sm:$0xff] %v24_v1 }
   0x8   :  { %37 = dma.vmem_to_hbm [thread:$0]  %s33_s12, 256, %s35_s15, [#allocation4]  }
   0x9   :  { %96 = dma.done.wait [#allocation4], 256  }
   0xa   :  { %97 = vsyncadd [#allocation4], 4294967040 }
   0xb   :  { %42 = vsyncpa [#allocation3], 1 }
   0xc   :  { %43 = vsyncpa [#allocation4], 1 }

</bundles_post_ra>
